<compile_context>
chip_gen: v7x
topology: tpu7x:2x2x1
jax: 0.10.0
libtpu: 0.0.40
codegen_flags: <defaults>
</compile_context>

<pallas_src>
import functools

import jax
import jax.numpy as jnp
from jax.experimental import pallas as pl
from jax.experimental.pallas import tpu as pltpu

LAYER_NORM_EPS = 1e-5


def _round_up(x, m):
    return (x + m - 1) // m * m


def _pick_seq_tile(S, cap=2048):
    """Largest divisor of S that is a multiple of 16 and <= cap (else full S)."""
    for cand in range(min(S, cap), 15, -1):
        if S % cand == 0 and cand % 16 == 0:
            return cand
    return S


def _swin_embed_kernel(x_ref, w_ref, pos_ref, g_ref, beta_ref, o_ref, *, d_real):
    # x_ref:   (ts, P)      token tile for one batch element (bf16)
    # w_ref:   (P, D_pad)   patch-projection weight, zero-padded in D (bf16)
    # pos_ref: (ts, D_pad)  abs. position embeds + proj bias, zero-padded (bf16)
    # g_ref:   (1, D_pad)   layernorm gamma, zero-padded (f32)
    # beta_ref:(1, D_pad)   layernorm beta, zero-padded (f32)
    # o_ref:   (ts, D_pad)  output tile, lane-dense (bf16)
    x = x_ref[...]
    w = w_ref[...]

    # Patch embedding on the MXU; f32 accumulation.
    y = jnp.dot(x, w, preferred_element_type=jnp.float32)
    # Position embeddings (with proj bias pre-folded), upcast to f32.
    y = y + pos_ref[...].astype(jnp.float32)

    d_pad = y.shape[-1]
    if d_real == d_pad:
        mean = jnp.mean(y, axis=-1, keepdims=True)
        centered = y - mean
        var = jnp.mean(centered * centered, axis=-1, keepdims=True)
    else:
        # INVARIANT: padded lanes (d >= d_real) of y are exactly zero because
        # w and pos are zero-padded in the wrapper.  Mask them out of the
        # LayerNorm statistics so numerics match the unpadded op exactly.
        lane = jax.lax.broadcasted_iota(jnp.int32, (1, d_pad), 1)
        maskf = (lane < d_real).astype(jnp.float32)
        inv_d = 1.0 / float(d_real)
        mean = jnp.sum(y * maskf, axis=-1, keepdims=True) * inv_d
        centered = y - mean
        var = jnp.sum(centered * centered * maskf, axis=-1, keepdims=True) * inv_d

    y_norm = centered * jax.lax.rsqrt(var + LAYER_NORM_EPS)
    out = y_norm * g_ref[...] + beta_ref[...]   # padded lanes -> 0 (gamma/beta pad = 0)

    o_ref[...] = out.astype(o_ref.dtype)


def swin_embeddings_forward(tokens_nchw, params, patch_size, *,
                            seq_tile=None,
                            matmul_dtype=jnp.bfloat16,
                            out_dtype=jnp.bfloat16,
                            strip_padding=False):
    """tokens_nchw: (B, C, H, W) float32.

    Returns hidden states of shape (S, B, D_pad) in `out_dtype`, where
    D_pad = round_up(D, 128) and the padded lanes (>= D) are exactly zero.
    Pass strip_padding=True to get the exact (S, B, D) shape (costs an extra
    HBM pass; the padded form is what the next matmul wants anyway).
    """
    B, C, H, W = tokens_nchw.shape
    p = patch_size
    hp, wp = H // p, W // p
    S = hp * wp
    P = p * p * C
    D = params["proj_w"].shape[1]
    D_pad = _round_up(D, 128)                 # lane-dense output / MXU N tile

    # Zero-pad parameters along the hidden dim to the lane-dense width.
    # Padded lanes MUST be zero (the masked-LayerNorm path relies on it).
    # (In a real model these would be pre-padded once, outside the step.)
    def pad_d(a):
        if D_pad == D:
            return a
        return jnp.pad(a, [(0, 0)] * (a.ndim - 1) + [(0, D_pad - D)])

    w = pad_d(params["proj_w"]).astype(matmul_dtype)
    # Fold the projection bias into the (absolute) position embeddings offline:
    # one fewer operand DMA and one fewer broadcast add per tile.
    pos = pad_d(params["pos_emb"] + params["proj_b"]).astype(jnp.bfloat16)
    gamma = pad_d(params["ln_g"]).astype(jnp.float32)
    beta = pad_d(params["ln_b"]).astype(jnp.float32)

    # einops: 'b c (h p1) (w p2) -> b (h w) (p1 p2 c)', plus MXU-dtype cast.
    # With allow_input_fusion=[0], XLA may fuse this into the kernel's input DMA.
    t = tokens_nchw.reshape(B, C, hp, p, wp, p)
    t = jnp.transpose(t, (0, 2, 4, 3, 5, 1))       # b, h, w, p1, p2, c
    tokens = t.reshape(B, S, P).astype(matmul_dtype)

    ts = _pick_seq_tile(S) if seq_tile is None else seq_tile
    if S % ts != 0:
        raise ValueError(f"seq_tile {ts} must divide S={S}")
    if ts != S and ts % 16 != 0:
        raise ValueError(f"seq_tile {ts} must be a multiple of 16 (bf16 sublane tiling)")
    n_s = S // ts

    kernel = functools.partial(_swin_embed_kernel, d_real=D)

    tok_b = jnp.dtype(matmul_dtype).itemsize
    out_b = jnp.dtype(out_dtype).itemsize
    cost = pl.CostEstimate(
        flops=int(2 * B * S * P * D_pad + 10 * B * S * D_pad),
        transcendentals=int(B * S),
        bytes_accessed=int(B * S * P * tok_b            # tokens (read once)
                           + P * D_pad * tok_b          # weight (read once)
                           + S * D_pad * 2              # pos+bias, bf16, read once
                           + B * S * D_pad * out_b      # output writeback
                           + 2 * D_pad * 4),            # gamma / beta
    )

    # Output laid out as (S, B*D_pad); block (s, b) targets rows [s*ts, ...)
    # and lanes [b*D_pad, (b+1)*D_pad), i.e. the (S, B, D) transpose is folded
    # into the output DMA.  Grid is (n_s, B): the inner (batch) axis keeps the
    # pos / weight / gamma / beta block indices constant, so they are fetched
    # once per outer step (pos) or once total (weight/gamma/beta).  Every (s, b)
    # grid point owns a distinct output block, so both axes are "parallel".
    out2d = pl.pallas_call(
        kernel,
        out_shape=jax.ShapeDtypeStruct((S, B * D_pad), out_dtype),
        grid_spec=pltpu.PrefetchScalarGridSpec(
            num_scalar_prefetch=0,
            grid=(n_s, B),
            in_specs=[
                pl.BlockSpec((None, ts, P), lambda s, b: (b, s, 0)),   # tokens tile
                pl.BlockSpec((P, D_pad), lambda s, b: (0, 0)),         # proj weight
                pl.BlockSpec((ts, D_pad), lambda s, b: (s, 0)),        # pos (+bias) tile
                pl.BlockSpec((1, D_pad), lambda s, b: (0, 0)),         # ln gamma
                pl.BlockSpec((1, D_pad), lambda s, b: (0, 0)),         # ln beta
            ],
            out_specs=pl.BlockSpec((ts, D_pad), lambda s, b: (s, b)),
        ),
        compiler_params=pltpu.CompilerParams(
            dimension_semantics=("parallel", "parallel"),
            allow_input_fusion=[0],
        ),
        cost_estimate=cost,
    )(tokens, w, pos, gamma, beta)

    # (S, B*D_pad) -> (S, B, D_pad) is a free row-major split.
    hidden = out2d.reshape(S, B, D_pad)
    if strip_padding and D_pad != D:
        # Full extra HBM pass; avoid unless the consumer truly needs (S, B, D).
        hidden = hidden[:, :, :D]

    # Dropout: identity (eval / p=0).
    # TODO(synk): Megatron RNG-tracker dropout + sequence-parallel scatter are
    #             distributed runtime features, not implemented here.
    return hidden


def _reference_forward(tokens_nchw, params, patch_size, matmul_dtype=jnp.bfloat16):
    """Pure-JAX reference (same MXU-input dtype, f32 accumulate + f32 epilogue)."""
    B, C, H, W = tokens_nchw.shape
    p = patch_size
    hp, wp = H // p, W // p
    t = tokens_nchw.reshape(B, C, hp, p, wp, p)
    t = jnp.transpose(t, (0, 2, 4, 3, 5, 1)).reshape(B, hp * wp, p * p * C)
    y = jnp.einsum("bsp,pd->bsd", t.astype(matmul_dtype),
                   params["proj_w"].astype(matmul_dtype),
                   preferred_element_type=jnp.float32)
    y = y + params["proj_b"].astype(jnp.float32)
    y = y + params["pos_emb"][None]
    mean = jnp.mean(y, axis=-1, keepdims=True)
    var = jnp.mean((y - mean) ** 2, axis=-1, keepdims=True)
    y = (y - mean) * jax.lax.rsqrt(var + LAYER_NORM_EPS)
    y = y * params["ln_g"] + params["ln_b"]
    return jnp.transpose(y, (1, 0, 2))


if __name__ == "__main__":
    # Small shapes consistent with Swin-T embeddings:
    #   batch=2, channels=3, spatial 32x32, patch_size=4 -> S=64, P=48, hidden D=96
    # (D=96 exercises the lane-padding + masked-LayerNorm path; 96 -> 128 lanes.)
    B, C, H, W = 2, 3, 32, 32
    patch_size = 4
    S = (H // patch_size) * (W // patch_size)      # 64
    P = patch_size * patch_size * C                # 48
    D = 96
    D_pad = _round_up(D, 128)                      # 128

    key = jax.random.PRNGKey(0)
    k_x, k_w, k_b, k_pos = jax.random.split(key, 4)

    tokens = jax.random.normal(k_x, (B, C, H, W), dtype=jnp.float32)
    params = {
        "proj_w": jax.random.normal(k_w, (P, D), dtype=jnp.float32) * 0.02,
        "proj_b": jax.random.normal(k_b, (1, D), dtype=jnp.float32) * 0.02,
        "pos_emb": jax.random.normal(k_pos, (S, D), dtype=jnp.float32) * 0.02,
        "ln_g": jnp.ones((1, D), dtype=jnp.float32),
        "ln_b": jnp.zeros((1, D), dtype=jnp.float32),
    }

    # seq_tile=32 so the test exercises a non-trivial (n_s=2, B=2) grid.
    fwd = jax.jit(functools.partial(swin_embeddings_forward,
                                    patch_size=patch_size, seq_tile=32))
    out = fwd(tokens, params)
    out = jax.block_until_ready(out)

    # Kernel returns the lane-padded, bf16 activation in (S, B, D_pad) order.
    assert out.shape == (S, B, D_pad), out.shape
    assert out.dtype == jnp.bfloat16, out.dtype

    out_f32 = out.astype(jnp.float32)
    # Padded lanes must be exactly zero (zero-padded w/pos/gamma/beta).
    assert float(jnp.max(jnp.abs(out_f32[:, :, D:]))) == 0.0, "padded lanes not zero"

    ref = _reference_forward(tokens, params, patch_size)
    err = float(jnp.max(jnp.abs(out_f32[:, :, :D] - ref)))
    # bf16 output store + bf16 pos/bias dominate the tolerance.
    assert jnp.allclose(out_f32[:, :, :D], ref, atol=2e-2, rtol=2e-2), (
        f"mismatch vs reference; max abs err = {err}")

    print("KERNEL_OK")
</pallas_src>

<mosaic_0001>
module attributes {stable_mosaic.version = 11 : i64} {
  func.func @_swin_embed_kernel(%arg0: i32, %arg1: i32, %arg2: memref<1x32x48xbf16, #tpu.memory_space<vmem>>, %arg3: memref<48x128xbf16, #tpu.memory_space<vmem>>, %arg4: memref<32x128xbf16, #tpu.memory_space<vmem>>, %arg5: memref<1x128xf32, #tpu.memory_space<vmem>>, %arg6: memref<1x128xf32, #tpu.memory_space<vmem>>, %arg7: memref<32x128xbf16, #tpu.memory_space<vmem>>) attributes {dimension_semantics = [#tpu.dimension_semantics<parallel>, #tpu.dimension_semantics<parallel>], iteration_bounds = array<i64: 2, 2>, scalar_prefetch = 0 : i64, scratch_operands = 0 : i64, tpu.core_type = #tpu.core_type<tc>, window_params = [{transform_indices = @transform_0, window_bounds = array<i64: 1, 32, 48>}, {pipeline_mode = #tpu.pipeline_mode<synchronous>, transform_indices = @transform_1, window_bounds = array<i64: 48, 128>}, {transform_indices = @transform_2, window_bounds = array<i64: 32, 128>}, {pipeline_mode = #tpu.pipeline_mode<synchronous>, transform_indices = @transform_3, window_bounds = array<i64: 1, 128>}, {pipeline_mode = #tpu.pipeline_mode<synchronous>, transform_indices = @transform_4, window_bounds = array<i64: 1, 128>}, {transform_indices = @transform_5, window_bounds = array<i64: 32, 128>}]} {
    %c0 = arith.constant 0 : index
    %c0_0 = arith.constant 0 : index
    %c0_1 = arith.constant 0 : index
    %0 = vector.load %arg2[%c0, %c0_0, %c0_1] : memref<1x32x48xbf16, #tpu.memory_space<vmem>>, vector<1x32x48xbf16>
    %1 = vector.shape_cast %0 : vector<1x32x48xbf16> to vector<32x48xbf16>
    %c0_2 = arith.constant 0 : index
    %c0_3 = arith.constant 0 : index
    %2 = vector.load %arg3[%c0_2, %c0_3] : memref<48x128xbf16, #tpu.memory_space<vmem>>, vector<48x128xbf16>
    %cst = arith.constant dense<0.000000e+00> : vector<32x128xf32>
    %3 = tpu.matmul %1, %2, %cst {dimension_numbers = #tpu.dot_dimension_numbers<[1], [0], [0], [1], [0, 0, 1, 1], [], []>} : vector<32x48xbf16>, vector<48x128xbf16>, vector<32x128xf32> -> vector<32x128xf32>
    %c0_4 = arith.constant 0 : index
    %c0_5 = arith.constant 0 : index
    %4 = vector.load %arg4[%c0_4, %c0_5] : memref<32x128xbf16, #tpu.memory_space<vmem>>, vector<32x128xbf16>
    %5 = arith.extf %4 : vector<32x128xbf16> to vector<32x128xf32>
    %6 = arith.addf %3, %5 : vector<32x128xf32>
    %7 = tpu.iota {dimensions = array<i32: 1>} : vector<1x128xi32>
    %c96_i32 = arith.constant 96 : i32
    %8 = vector.broadcast %c96_i32 : i32 to vector<1x128xi32>
    %9 = arith.cmpi slt, %7, %8 : vector<1x128xi32>
    %10 = arith.extui %9 : vector<1x128xi1> to vector<1x128xi32>
    %11 = arith.sitofp %10 : vector<1x128xi32> to vector<1x128xf32>
    %12 = vector.broadcast %11 : vector<1x128xf32> to vector<32x128xf32>
    %13 = arith.mulf %6, %12 : vector<32x128xf32>
    %cst_6 = arith.constant dense<0.000000e+00> : vector<32xf32>
    %14 = vector.multi_reduction <add>, %13, %cst_6 [1] : vector<32x128xf32> to vector<32xf32>
    %15 = vector.shape_cast %14 : vector<32xf32> to vector<32x1xf32>
    %cst_7 = arith.constant 0.010416667 : f32
    %16 = vector.broadcast %cst_7 : f32 to vector<32x1xf32>
    %17 = arith.mulf %15, %16 : vector<32x1xf32>
    %18 = vector.broadcast %17 : vector<32x1xf32> to vector<32x128xf32>
    %19 = arith.subf %6, %18 : vector<32x128xf32>
    %20 = arith.mulf %19, %19 : vector<32x128xf32>
    %21 = vector.broadcast %11 : vector<1x128xf32> to vector<32x128xf32>
    %22 = arith.mulf %20, %21 : vector<32x128xf32>
    %cst_8 = arith.constant dense<0.000000e+00> : vector<32xf32>
    %23 = vector.multi_reduction <add>, %22, %cst_8 [1] : vector<32x128xf32> to vector<32xf32>
    %24 = vector.shape_cast %23 : vector<32xf32> to vector<32x1xf32>
    %cst_9 = arith.constant 0.010416667 : f32
    %25 = vector.broadcast %cst_9 : f32 to vector<32x1xf32>
    %26 = arith.mulf %24, %25 : vector<32x1xf32>
    %cst_10 = arith.constant 9.99999974E-6 : f32
    %27 = vector.broadcast %cst_10 : f32 to vector<32x1xf32>
    %28 = arith.addf %26, %27 : vector<32x1xf32>
    %29 = math.rsqrt %28 : vector<32x1xf32>
    %30 = vector.broadcast %29 : vector<32x1xf32> to vector<32x128xf32>
    %31 = arith.mulf %19, %30 : vector<32x128xf32>
    %c0_11 = arith.constant 0 : index
    %c0_12 = arith.constant 0 : index
    %32 = vector.load %arg5[%c0_11, %c0_12] : memref<1x128xf32, #tpu.memory_space<vmem>>, vector<1x128xf32>
    %33 = vector.broadcast %32 : vector<1x128xf32> to vector<32x128xf32>
    %34 = arith.mulf %31, %33 : vector<32x128xf32>
    %c0_13 = arith.constant 0 : index
    %c0_14 = arith.constant 0 : index
    %35 = vector.load %arg6[%c0_13, %c0_14] : memref<1x128xf32, #tpu.memory_space<vmem>>, vector<1x128xf32>
    %36 = vector.broadcast %35 : vector<1x128xf32> to vector<32x128xf32>
    %37 = arith.addf %34, %36 : vector<32x128xf32>
    %38 = arith.truncf %37 : vector<32x128xf32> to vector<32x128xbf16>
    %c0_15 = arith.constant 0 : index
    %c0_16 = arith.constant 0 : index
    %39 = vector.load %arg7[%c0_15, %c0_16] : memref<32x128xbf16, #tpu.memory_space<vmem>>, vector<32x128xbf16>
    tpu.vector_store %arg7[%c0_15, %c0_16], %38 {strides = array<i32>} : memref<32x128xbf16, #tpu.memory_space<vmem>>, vector<32x128xbf16>,
    return
  }
  func.func @transform_0(%arg0: i32, %arg1: i32) -> (i32, i32, i32) {
    %c0_i32 = arith.constant 0 : i32
    %c0_i32_0 = arith.constant 0 : i32
    return %arg1, %arg0, %c0_i32 : i32, i32, i32
  }
  func.func @transform_1(%arg0: i32, %arg1: i32) -> (i32, i32) {
    %c0_i32 = arith.constant 0 : i32
    %c0_i32_0 = arith.constant 0 : i32
    %c0_i32_1 = arith.constant 0 : i32
    return %c0_i32, %c0_i32_0 : i32, i32
  }
  func.func @transform_2(%arg0: i32, %arg1: i32) -> (i32, i32) {
    %c0_i32 = arith.constant 0 : i32
    %c0_i32_0 = arith.constant 0 : i32
    return %arg0, %c0_i32 : i32, i32
  }
  func.func @transform_3(%arg0: i32, %arg1: i32) -> (i32, i32) {
    %c0_i32 = arith.constant 0 : i32
    %c0_i32_0 = arith.constant 0 : i32
    %c0_i32_1 = arith.constant 0 : i32
    return %c0_i32, %c0_i32_0 : i32, i32
  }
  func.func @transform_4(%arg0: i32, %arg1: i32) -> (i32, i32) {
    %c0_i32 = arith.constant 0 : i32
    %c0_i32_0 = arith.constant 0 : i32
    %c0_i32_1 = arith.constant 0 : i32
    return %c0_i32, %c0_i32_0 : i32, i32
  }
  func.func @transform_5(%arg0: i32, %arg1: i32) -> (i32, i32) {
    %c0_i32 = arith.constant 0 : i32
    return %arg0, %arg1 : i32, i32
  }
}

</mosaic_0001>

<bundles_post_ra>
// kernel: swin_embeddings_forward.1
= control target key start
LH: loop header
LB: loop body
LE: loop exit
PB: predicated region body
PF: predicated region fallthrough
CT: control target
= control target key end

     0   :  { %s847_s18 = smov 0   ;;  %s849_s19 = smov 0   ;;  %s959_s0 = inlined_call_operand.vmem [shape: bf16[2,64,48], index: 0, kind: input, shape index: {}]   ;;  %s960_s1 = inlined_call_operand.vmem [shape: bf16[48,128], index: 1, kind: input, shape index: {}]   ;;  %s961_s2 = inlined_call_operand.vmem [shape: bf16[64,128], index: 2, kind: input, shape index: {}]   ;;  %s962_s3 = inlined_call_operand.vmem [shape: f32[1,128], index: 3, kind: input, shape index: {}]   ;;  %s963_s4 = inlined_call_operand.vmem [shape: f32[1,128], index: 4, kind: input, shape index: {}]   ;;  %s964_s5 = inlined_call_operand.vmem [shape: bf16[64,256], index: 5, kind: output, shape index: {}]  }
   0x1   :  { %s851_s20 = smov 0   ;;  %s853_s21 = smov 0  }
   0x2   :  { %s855_s22 = smov 0   ;;  %s857_s23 = smov 0  }
   0x3   :  { %s859_s24 = smov 0  }
   0x4 LB: > { %s24_s25 = sadd.s32 1, %s806_s22  ;;  %s27_s26 = sadd.s32 1, %s810_s23  ;;  %s814_s24 = sphi %s859_s24, %s15_s24   ;;  %s810_s23 = sphi %s857_s23, %s971_s23   ;;  %s806_s22 = sphi %s855_s22, %s970_s22   ;;  %s802_s21 = sphi %s853_s21, %s969_s21   ;;  %s798_s20 = sphi %s851_s20, %s968_s20   ;;  %s794_s19 = sphi %s849_s19, %s967_s19   ;;  %s790_s18 = sphi %s847_s18, %s966_s18  }
   0x5   : > { %p25_p0 = scmp.ge.s32.totalorder %s24_s25, 2  ;;  %s619_s27 = sadd.s32 4294967295, %s814_s24  }
   0x6   : > { %p163_p1 = scmp.ne.s32.totalorder %s794_s19, %s790_s18  ;;  %p164_p2 = scmp.eq.s32.totalorder %s619_s27, 3 }
   0x7   : > { %s973_s25 = smov (%p25_p0, %s24_s25), 0  ;;  %s975_s26 = smov (!%p25_p0, %s27_s26), %s810_s23 }
   0x8   : > { %s149_s28 = ssub.s32 %s806_s22, %s973_s25  ;;  %p29_p3 = scmp.ge.s32.totalorder %s975_s26, 2 }
   0x9   : > { %p623_p4 = scmp.ge.s32.totalorder %s814_s24, 1  ;;  %p893_p5 = por %p164_p2, %p163_p1 }
   0xa   : > { %p219_p6 = scmp.lt.s32.totalorder %s814_s24, 5  ;;  %s977_s26 = smov (%p29_p3, %s975_s26), 0 }
   0xb   : > { %s148_s30 = ssub.s32 %s810_s23, %s977_s26  ;;  %s153_s7 = sadd.s32 1, %s794_s19 }
   0xc   : > { %p220_p7 = pnand %p623_p4, %p219_p6  ;;  %s150_s6 = sor.u32 %s149_s28, %s148_s30 }
   0xd   : > { %p151_p8 = scmp.eq.s32.totalorder %s150_s6, 0  ;;  %v747_v0 = vld [vmem:[%s960_s1] sm:$0xff] (!%p220_p7)   ;;  %s625_s11 = sshll.u32 (!%p220_p7), %s802_s21, 2  ;;  %v748_v1 = vld [vmem:[%s960_s1 + $0x8] sm:$0xff] (!%p220_p7)   ;;  %v749_v2 = vld [vmem:[%s960_s1 + $0x10] sm:$0xff] (!%p220_p7)   ;;  %vm319_vm0 = vcmask (!%p220_p7), 392192   ;;  %v375_v5 = vlaneseq (!%p220_p7) }
   0xe   : > { %223 = sbr.rel (%p220_p7) target bundleno = 578 (0x242), region = 40  ;;  %p256_p9 = scmp.lt.s32.totalorder (!%p220_p7), %s798_s20, 1  ;;  %680 = vmatprep.subr.bf16.mxu0 (!%p220_p7), %v747_v0  ;;  %v816_v14 = vmov (!%p220_p7), 0.0   ;;  %v638_v61 = vld [vmem:[%s962_s3] ss:$0 sm:$0xff] (!%p220_p7) }
   0xf   : > { %s904_s8 = scalar_select %p151_p8, %s794_s19, %s153_s7  }
  0x10   : > { %p258_p10 = scmp.lt.s32.totalorder (!%p220_p7), %s625_s11, 7  ;;  %681 = vmatpush3.bf16.msra.mxu0 (!%p220_p7), %v747_v0  ;;  %v376_v6 = vand.u32 (!%p220_p7), 127, %v375_v5  ;;  %s252_s15 = sand.u32 (!%p220_p7), 1, %s790_s18  }
  0x11   : > { %682 = vmatprep.subr.bf16.mxu0 (!%p220_p7), %v748_v1 }
  0x12   : > { %vm377_vm1 = vcmp.lt.s32.totalorder (!%p220_p7), %v376_v6, 96 }
  0x13   : > { %v637_v15 = vsel (!%p220_p7), %vm377_vm1, 1.0, %v816_v14 }
  0x14   : > { %683 = vmatpush3.bf16.msra.mxu0 (!%p220_p7), %v748_v1 }
  0x15   : > { %s257_s14 = scalar_select %p256_p9, %s798_s20, 1  ;;  %684 = vmatprep.subr.bf16.mxu0 %v749_v2 }
  0x16   : > { %s979_s11 = smov (!%p258_p10, %s625_s11), 7  ;;  %s654_s18 = sshll.u32 (%p893_p5), %s802_s21, 3 }
  0x17   : > { %s626_s17 = sshll.u32 %s257_s14, 3  ;;  %s629_s9 = sshll.u32 %s979_s11, 2 }
  0x18   : > { %s261_s27 = sadd.s32 %s626_s17, %s979_s11  ;;  %685 = vmatpush3.bf16.msra.mxu0 %v749_v2  ;;  %s269_s13 = scalar_lea.vmem %s961_s2, %s629_s9  ;;  %v639_v2 = vld [vmem:[%s963_s4] ss:$0 sm:$0xff] }
  0x19   : > { %s627_s28 = sshll.u32 %s261_s27, 2  ;;  %v673_v7 = vld [vmem:[%s269_s13 + $0x8] sm:$0xff]   ;;  %v656_v8 = vld [vmem:[%s269_s13] sm:$0xff]   ;;  %s624_s27 = sshll.u32 %s252_s15, 4 }
  0x1a   : > { %s263_s7 = scalar_lea.vmem %s959_s0, %s627_s28  ;;  %v661_v9 = vunpack.c.l.bf16 %v673_v7  ;;  %v657_v10 = vunpack.c.l.bf16 %v656_v8  ;;  %v662_v11 = vunpack.c.h.bf16 %v673_v7  ;;  %v658_v13 = vunpack.c.h.bf16 %v656_v8  ;;  %s254_s28 = scalar_lea.vmem [#allocation2], %s624_s27 }
  0x1b   : > { %v750_v3 = vld [vmem:[%s263_s7] sm:$0xff]   ;;  %v751_v4 = vld [vmem:[%s263_s7 + $0x8] sm:$0xff]   ;;  %s483_s30 = sadd.s32 (%p893_p5), %s798_s20, %s654_s18 }
  0x1c   : > { %686 = vmatprep.mubr.msk.bf16.mxu0 %vm319_vm0, %v750_v3  ;;  %s647_s6 = sshll.u32 (%p893_p5), %s483_s30, 2 }
  0x1d   : > { %687 = vmatmul.mubr.msk.bf16.vlgmr.msra.gmra.mrb[0].mxu0 %vm319_vm0, %v751_v4  ;;  %s485_s10 = scalar_lea.vmem (%p893_p5), %s964_s5, %s647_s6 }
  0xf0   : > { %v688_v12 = vpop.f32.mrb[0].mxu0 }
  0xf1   : > { %v369_v16 = vadd.f32 %v688_v12, %v661_v9  ;;  %v360_v17 = vpop.f32.mrb[1].mxu0 }
  0xf2   : > { %v361_v18 = vadd.f32 %v657_v10, %v360_v17  ;;  %v689_v19 = vpop.f32.mrb[2].mxu0 }
  0xf3   : > { %v372_v20 = vadd.f32 %v689_v19, %v662_v11  ;;  %v363_v21 = vpop.f32.mrb[3].mxu0  ;;  %v382_v22 = vmul.f32 %v637_v15, %v369_v16 }
  0xf4   : > { %v364_v23 = vadd.f32 %v658_v13, %v363_v21  ;;  %v380_v24 = vmul.f32 %v637_v15, %v361_v18 }
  0xf5   : > { %388 = vadd.xlane.f32.xlu1 %v382_v22  ;;  %v383_v25 = vmul.f32 %v637_v15, %v372_v20 }
  0xf6   : > { %384 = vadd.xlane.f32.xlu0 %v380_v24  ;;  %v381_v26 = vmul.f32 %v637_v15, %v364_v23 }
  0xf9   : > { %390 = vadd.xlane.f32.xlu1 %v383_v25 }
  0xfa   : > { %386 = vadd.xlane.f32.xlu0 %v381_v26 }
 0x182   : > { %v389_v27 = vpop.xlane.xlu1 %388 }
 0x183   : > { %v394_v28 = vmul.f32 0.010416667, %v389_v27  ;;  %v385_v29 = vpop.xlane.xlu0 %384 }
 0x184   : > { %v392_v30 = vmul.f32 0.010416667, %v385_v29 }
 0x185   : > { %v398_v31 = vsub.f32 %v369_v16, %v394_v28 }
 0x186   : > { %v396_v32 = vsub.f32 %v361_v18, %v392_v30  ;;  %v391_v33 = vpop.xlane.xlu1 %390 }
 0x187   : > { %v395_v34 = vmul.f32 0.010416667, %v391_v33  ;;  %v387_v35 = vpop.xlane.xlu0 %386  ;;  %v402_v41 = vmul.f32 %v398_v31, %v398_v31 }
 0x188   : > { %v393_v36 = vmul.f32 0.010416667, %v387_v35  ;;  %v400_v37 = vmul.f32 %v396_v32, %v396_v32 }
 0x189   : > { %v399_v38 = vsub.f32 %v372_v20, %v395_v34  ;;  %v406_v43 = vmul.f32 %v637_v15, %v402_v41 }
 0x18a   : > { %v397_v39 = vsub.f32 %v364_v23, %v393_v36  ;;  %v404_v40 = vmul.f32 %v637_v15, %v400_v37 }
 0x18b   : > { %v403_v45 = vmul.f32 %v399_v38, %v399_v38 }
 0x18c   : > { %408 = vadd.xlane.f32.xlu0 %v404_v40  ;;  %v401_v42 = vmul.f32 %v397_v39, %v397_v39 }
 0x18d   : > { %v407_v46 = vmul.f32 %v637_v15, %v403_v45 }
 0x18e   : > { %v405_v44 = vmul.f32 %v637_v15, %v401_v42 }
 0x190   : > { %412 = vadd.xlane.f32.xlu0 %v406_v43  ;;  %410 = vadd.xlane.f32.xlu1 %v405_v44 }
 0x194   : > { %414 = vadd.xlane.f32.xlu1 %v407_v46 }
 0x219   : > { %v409_v47 = vpop.xlane.xlu0 %408 }
 0x21a   : > { %v416_v48 = vmul.f32 0.010416667, %v409_v47 }
 0x21c   : > { %v420_v49 = vadd.f32 1e-05, %v416_v48 }
 0x21d   : > { %v411_v50 = vpop.xlane.xlu1 %410  ;;  %v413_v51 = vpop.xlane.xlu0 %412 }
 0x21e   : > { %752 = vrsqrt.f32 %v420_v49  ;;  %v417_v52 = vmul.f32 0.010416667, %v411_v50  ;;  %v418_v53 = vmul.f32 0.010416667, %v413_v51 }
 0x220   : > { %v421_v54 = vadd.f32 1e-05, %v417_v52  ;;  %v422_v55 = vadd.f32 1e-05, %v418_v53 }
 0x221   : > { %v415_v56 = vpop.xlane.xlu1 %414 }
 0x222   : > { %754 = vrsqrt.f32 %v421_v54  ;;  %v419_v57 = vmul.f32 0.010416667, %v415_v56 }
 0x223   : > { %756 = vrsqrt.f32 %v422_v55 }
 0x224   : > { %v423_v58 = vadd.f32 1e-05, %v419_v57 }
 0x226   : > { %758 = vrsqrt.f32 %v423_v58 }
 0x228   : > { %v753_v59 = vpop.eup %752 }
 0x229   : > { %v428_v60 = vmul.f32 %v753_v59, %v396_v32 }
 0x22b   : > { %v439_v0 = vmul.f32 %v638_v61, %v428_v60 }
 0x22c   : > { %v755_v62 = vpop.eup %754 }
 0x22d   : > { %v757_v63 = vpop.eup %756  ;;  %v429_v1 = vmul.f32 %v755_v62, %v397_v39  ;;  %v450_v6 = vadd.f32 %v639_v2, %v439_v0 }
 0x22e   : > { %v430_v3 = vmul.f32 %v757_v63, %v398_v31 }
 0x22f   : > { %v440_v4 = vmul.f32 %v638_v61, %v429_v1 }
 0x230   : > { %v759_v5 = vpop.eup %758  ;;  %v441_v8 = vmul.f32 %v638_v61, %v430_v3 }
 0x231   : > { %v451_v7 = vadd.f32 %v639_v2, %v440_v4  ;;  %v431_v9 = vmul.f32 %v759_v5, %v399_v38 }
 0x232   : > { %v452_v12 = vadd.f32 %v639_v2, %v441_v8 }
 0x233   : > { %v666_v10 = vpack.c.bf16 %v451_v7, %v450_v6  ;;  %v442_v11 = vmul.f32 %v638_v61, %v431_v9  ;;  %480 = sbr.rel (!%p893_p5) target bundleno = 578 (0x242), region = 44 }
 0x235   : > { %667 = vst [vmem:[%s254_s28] sm:$0xff] %v666_v10   ;;  %v453_v13 = vadd.f32 %v639_v2, %v442_v11 }
 0x237   : > { %v671_v14 = vpack.c.bf16 %v453_v13, %v452_v12 }
 0x239   : > { %674 = vst [vmem:[%s254_s28 + $0x8] sm:$0xff] %v671_v14  }
 0x23c   : > { %v501_v15 = vld [vmem:[%s254_s28] sm:$0xf]  ;;  %v503_v16 = vld [vmem:[%s254_s28 + $0x4] sm:$0xf] }
 0x23d   : > { %502 = vst [vmem:[%s485_s10] sm:$0xf] %v501_v15  ;;  %504 = vst [vmem:[%s485_s10 + $0x8] sm:$0xf] %v503_v16 }
 0x240   : > { %v505_v17 = vld [vmem:[%s254_s28 + $0x8] sm:$0xf]  ;;  %v507_v18 = vld [vmem:[%s254_s28 + $0xc] sm:$0xf] }
 0x241   : > { %506 = vst [vmem:[%s485_s10 + $0x10] sm:$0xf] %v505_v17  ;;  %508 = vst [vmem:[%s485_s10 + $0x18] sm:$0xf] %v507_v18 }
 0x242 PF: > { %s15_s24 = sadd.s32 1, %s814_s24   ;;  %s966_s18 = smov %s794_s19 }
 0x243   : > { %p12_p11 = scmp.ge.s32.totalorder %s15_s24, 6   ;;  %s967_s19 = smov %s904_s8 }
 0x244   : > { %s968_s20 = smov %s806_s22  ;;  %s969_s21 = smov %s810_s23 }
 0x245   : > { %s970_s22 = smov %s973_s25  ;;  %s971_s23 = smov %s977_s26 }
 0x246   :  { %14 = sbr.rel (!%p12_p11) target bundleno = 4 (0x4), region = 114 }

</bundles_post_ra>
